<compile_context>
chip_gen: v5e
topology: v5e:2x2
jax: 0.10.0
libtpu: 0.0.40
codegen_flags: <defaults>
</compile_context>

<pallas_src>
import functools

import jax
import jax.numpy as jnp
from jax.experimental import pallas as pl
from jax.experimental.pallas import tpu as pltpu

GAMMA = 2     # fixed at 2 -> explicit squaring in the kernel
ALPHA = 1.0   # PyTorch default alpha=None -> alpha=1 (multiply dropped)


def _focal_loss_kernel(x_ref, t_ref, o_ref, *, total_n, tm, lanes,
                       steps_per_core, need_mask):
    c = pl.program_id(0)   # TensorCore split (parallel)
    i = pl.program_id(1)   # row-tile step (arbitrary / reduction axis)

    @pl.when(i == 0)
    def _():
        o_ref[...] = jnp.zeros_like(o_ref)

    x = x_ref[...].astype(jnp.float32)
    t = t_ref[...].astype(jnp.float32)

    # Numerically-stable BCE-with-logits (torch formulation):
    #   max(x, 0) - x*t + log(1 + exp(-|x|))
    bce = jnp.maximum(x, 0.0) - x * t + jnp.log1p(jnp.exp(-jnp.abs(x)))

    # pt = exp(-bce) kept general so soft (non-{0,1}) targets match torch exactly.
    # TODO(synk): on v7x one EUP op/elem could be saved for hard {0,1} targets via
    # pt = t*p + (1-t)*(1-p), reusing p = sigmoid(x) from the BCE term.
    pt = jnp.exp(-bce)
    omp = 1.0 - pt
    focal = omp * (omp * bce)   # (1 - pt)**2 * bce as explicit VPU multiplies

    if need_mask:
        # Mask padded elements (global flat index >= total_n). Valid for < 2^31 elems.
        row = jax.lax.broadcasted_iota(jnp.int32, (tm, lanes), 0)
        lane = jax.lax.broadcasted_iota(jnp.int32, (tm, lanes), 1)
        flat = ((c * steps_per_core + i) * tm + row) * lanes + lane
        focal = jnp.where(flat < total_n, focal, 0.0)

    # Fold the tm rows onto the resident (8, lanes) accumulator: pure vreg adds;
    # the single cross-lane/sublane reduce happens once, outside the kernel.
    o_ref[...] += focal.reshape(tm // 8, 8, lanes).sum(axis=0)


def _round_up(x, m):
    return (x + m - 1) // m * m


def focal_loss(inputs, targets, *, max_tile_rows=8192, lanes=128, num_cores=2):
    """Focal loss (gamma=2, alpha=1, mean reduction) over arbitrary-shaped inputs."""
    assert inputs.shape == targets.shape
    total_n = int(inputs.size)
    assert total_n > 0

    x_flat = inputs.reshape(-1)
    # {0,1} targets are exact in bf16 -> halves this input's HBM traffic.
    t_flat = targets.astype(jnp.bfloat16).reshape(-1)

    rows = pl.cdiv(total_n, lanes)
    # 8-aligned row tile; large (multi-MiB) blocks amortize per-step overhead.
    tm = min(max_tile_rows, _round_up(pl.cdiv(rows, num_cores), 8))
    steps_per_core = pl.cdiv(rows, num_cores * tm)
    padded_rows = num_cores * steps_per_core * tm
    padded_n = padded_rows * lanes

    need_mask = padded_n != total_n
    if need_mask:
        pad = padded_n - total_n
        x_flat = jnp.pad(x_flat, (0, pad))
        t_flat = jnp.pad(t_flat, (0, pad))

    x2d = x_flat.reshape(padded_rows, lanes)
    t2d = t_flat.reshape(padded_rows, lanes)

    kernel = functools.partial(
        _focal_loss_kernel, total_n=total_n, tm=tm, lanes=lanes,
        steps_per_core=steps_per_core, need_mask=need_mask)

    partials = pl.pallas_call(
        kernel,
        out_shape=jax.ShapeDtypeStruct((num_cores, 8, lanes), jnp.float32),
        grid_spec=pltpu.PrefetchScalarGridSpec(
            num_scalar_prefetch=0,
            grid=(num_cores, steps_per_core),
            in_specs=[
                pl.BlockSpec((tm, lanes), lambda c, i: (c * steps_per_core + i, 0)),
                pl.BlockSpec((tm, lanes), lambda c, i: (c * steps_per_core + i, 0)),
            ],
            out_specs=pl.BlockSpec((None, 8, lanes), lambda c, i: (c, 0, 0)),
        ),
        compiler_params=pltpu.CompilerParams(
            dimension_semantics=("parallel", "arbitrary"),
            # Max block footprint: (4 MiB f32 + 2 MiB bf16) x 2 pipeline buffers
            # ~= 12 MiB; 48 MiB leaves headroom and stays under v7x's 64 MiB VMEM.
            vmem_limit_bytes=48 * 1024 * 1024,
        ),
    )(x2d, t2d)

    # size_average=True -> mean over all (unpadded) elements; the tiny final
    # cross-lane reduce over (2, 8, 128) partials is done in plain JAX.
    return jnp.sum(partials) / jnp.float32(total_n)


def focal_loss_ref(inputs, targets):
    x = inputs.astype(jnp.float32)
    t = targets.astype(jnp.float32)
    bce = jnp.maximum(x, 0.0) - x * t + jnp.log1p(jnp.exp(-jnp.abs(x)))
    pt = jnp.exp(-bce)
    return jnp.mean(ALPHA * (1.0 - pt) ** GAMMA * bce)


if __name__ == "__main__":
    key = jax.random.PRNGKey(0)
    kx, kt, kx2, kt2 = jax.random.split(key, 4)

    # NCHW logits and {0,1} targets (divisible-by-128 case, no masking path).
    B, C, H, W = 2, 4, 16, 16
    inputs = jax.random.normal(kx, (B, C, H, W), dtype=jnp.float32)
    targets = jax.random.bernoulli(kt, 0.3, (B, C, H, W)).astype(jnp.float32)

    out = jax.block_until_ready(focal_loss(inputs, targets))
    ref = focal_loss_ref(inputs, targets)
    assert jnp.allclose(out, ref, rtol=1e-5, atol=1e-6), (out, ref)

    # Ragged case (exercises padding + flat-index masking).
    inputs2 = jax.random.normal(kx2, (3, 5, 7, 11), dtype=jnp.float32)
    targets2 = jax.random.bernoulli(kt2, 0.3, (3, 5, 7, 11)).astype(jnp.float32)

    out2 = jax.block_until_ready(focal_loss(inputs2, targets2))
    ref2 = focal_loss_ref(inputs2, targets2)
    assert jnp.allclose(out2, ref2, rtol=1e-5, atol=1e-6), (out2, ref2)

    print("KERNEL_OK")
</pallas_src>

<mosaic_0001>
module attributes {stable_mosaic.version = 11 : i64} {
  func.func @_focal_loss_kernel(%arg0: i32, %arg1: i32, %arg2: memref<8x128xf32, #tpu.memory_space<vmem>>, %arg3: memref<8x128xbf16, #tpu.memory_space<vmem>>, %arg4: memref<1x8x128xf32, #tpu.memory_space<vmem>>) attributes {dimension_semantics = [#tpu.dimension_semantics<parallel>, #tpu.dimension_semantics<arbitrary>], iteration_bounds = array<i64: 2, 1>, scalar_prefetch = 0 : i64, scratch_operands = 0 : i64, tpu.core_type = #tpu.core_type<tc>, window_params = [{transform_indices = @transform_0, window_bounds = array<i64: 8, 128>}, {transform_indices = @transform_1, window_bounds = array<i64: 8, 128>}, {transform_indices = @transform_2, window_bounds = array<i64: 1, 8, 128>}]} {
    %c0_i32 = arith.constant 0 : i32
    %0 = arith.cmpi eq, %arg1, %c0_i32 : i32
    %1 = arith.extui %0 : i1 to i32
    %c0_i32_0 = arith.constant 0 : i32
    %2 = arith.cmpi ne, %1, %c0_i32_0 : i32
    scf.if %2 {
      %cst_14 = arith.constant 0.000000e+00 : f32
      %31 = vector.broadcast %cst_14 : f32 to vector<8x128xf32>
      %c0_15 = arith.constant 0 : index
      %c0_16 = arith.constant 0 : index
      %c0_17 = arith.constant 0 : index
      %32 = vector.load %arg4[%c0_15, %c0_16, %c0_17] : memref<1x8x128xf32, #tpu.memory_space<vmem>>, vector<1x8x128xf32>
      %33 = vector.shape_cast %32 : vector<1x8x128xf32> to vector<8x128xf32>
      %34 = vector.shape_cast %31 : vector<8x128xf32> to vector<1x8x128xf32>
      tpu.vector_store %arg4[%c0_15, %c0_16, %c0_17], %34 {strides = array<i32>} : memref<1x8x128xf32, #tpu.memory_space<vmem>>, vector<1x8x128xf32>,
    } else {
    }
    %c0 = arith.constant 0 : index
    %c0_1 = arith.constant 0 : index
    %3 = vector.load %arg2[%c0, %c0_1] : memref<8x128xf32, #tpu.memory_space<vmem>>, vector<8x128xf32>
    %c0_2 = arith.constant 0 : index
    %c0_3 = arith.constant 0 : index
    %4 = vector.load %arg3[%c0_2, %c0_3] : memref<8x128xbf16, #tpu.memory_space<vmem>>, vector<8x128xbf16>
    %5 = arith.extf %4 : vector<8x128xbf16> to vector<8x128xf32>
    %cst = arith.constant 0.000000e+00 : f32
    %6 = vector.broadcast %cst : f32 to vector<8x128xf32>
    %7 = arith.maximumf %3, %6 : vector<8x128xf32>
    %8 = arith.mulf %3, %5 : vector<8x128xf32>
    %9 = arith.subf %7, %8 : vector<8x128xf32>
    %10 = math.absf %3 : vector<8x128xf32>
    %cst_4 = arith.constant 0.000000e+00 : f32
    %11 = vector.broadcast %cst_4 : f32 to vector<8x128xf32>
    %12 = arith.subf %11, %10 : vector<8x128xf32>
    %13 = math.exp %12 : vector<8x128xf32>
    %14 = math.log1p %13 : vector<8x128xf32>
    %15 = arith.addf %9, %14 : vector<8x128xf32>
    %cst_5 = arith.constant 0.000000e+00 : f32
    %16 = vector.broadcast %cst_5 : f32 to vector<8x128xf32>
    %17 = arith.subf %16, %15 : vector<8x128xf32>
    %18 = math.exp %17 : vector<8x128xf32>
    %cst_6 = arith.constant 1.000000e+00 : f32
    %19 = vector.broadcast %cst_6 : f32 to vector<8x128xf32>
    %20 = arith.subf %19, %18 : vector<8x128xf32>
    %21 = arith.mulf %20, %15 : vector<8x128xf32>
    %22 = arith.mulf %20, %21 : vector<8x128xf32>
    %c0_7 = arith.constant 0 : index
    %c0_8 = arith.constant 0 : index
    %c0_9 = arith.constant 0 : index
    %23 = vector.load %arg4[%c0_7, %c0_8, %c0_9] : memref<1x8x128xf32, #tpu.memory_space<vmem>>, vector<1x8x128xf32>
    %24 = vector.shape_cast %23 : vector<1x8x128xf32> to vector<8x128xf32>
    %25 = vector.shape_cast %22 : vector<8x128xf32> to vector<1x8x128xf32>
    %cst_10 = arith.constant dense<0.000000e+00> : vector<8x128xf32>
    %26 = vector.multi_reduction <add>, %25, %cst_10 [0] : vector<1x8x128xf32> to vector<8x128xf32>
    %27 = arith.addf %24, %26 : vector<8x128xf32>
    %c0_11 = arith.constant 0 : index
    %c0_12 = arith.constant 0 : index
    %c0_13 = arith.constant 0 : index
    %28 = vector.load %arg4[%c0_11, %c0_12, %c0_13] : memref<1x8x128xf32, #tpu.memory_space<vmem>>, vector<1x8x128xf32>
    %29 = vector.shape_cast %28 : vector<1x8x128xf32> to vector<8x128xf32>
    %30 = vector.shape_cast %27 : vector<8x128xf32> to vector<1x8x128xf32>
    tpu.vector_store %arg4[%c0_11, %c0_12, %c0_13], %30 {strides = array<i32>} : memref<1x8x128xf32, #tpu.memory_space<vmem>>, vector<1x8x128xf32>,
    return
  }
  func.func @transform_0(%arg0: i32, %arg1: i32) -> (i32, i32) {
    %c1_i32 = arith.constant 1 : i32
    %0 = arith.muli %arg0, %c1_i32 : i32
    %1 = arith.addi %0, %arg1 : i32
    %c0_i32 = arith.constant 0 : i32
    %c0_i32_0 = arith.constant 0 : i32
    return %1, %c0_i32 : i32, i32
  }
  func.func @transform_1(%arg0: i32, %arg1: i32) -> (i32, i32) {
    %c1_i32 = arith.constant 1 : i32
    %0 = arith.muli %arg0, %c1_i32 : i32
    %1 = arith.addi %0, %arg1 : i32
    %c0_i32 = arith.constant 0 : i32
    %c0_i32_0 = arith.constant 0 : i32
    return %1, %c0_i32 : i32, i32
  }
  func.func @transform_2(%arg0: i32, %arg1: i32) -> (i32, i32, i32) {
    %c0_i32 = arith.constant 0 : i32
    %c0_i32_0 = arith.constant 0 : i32
    %c0_i32_1 = arith.constant 0 : i32
    return %arg0, %c0_i32, %c0_i32_0 : i32, i32, i32
  }
}

</mosaic_0001>

<bundles_post_ra>
// kernel: tpu_custom_call.1
= control target key start
LH: loop header
LB: loop body
LE: loop exit
PB: predicated region body
PF: predicated region fallthrough
CT: control target
= control target key end

     0   :  { %7 = vsyncpa [#allocation3], 0  ;;  %s769_s0 = inlined_call_operand.hbm [shape: f32[16,128], index: 0, kind: input, shape index: {}]   ;;  %s770_s1 = inlined_call_operand.hbm [shape: bf16[16,128], index: 1, kind: input, shape index: {}]   ;;  %s771_s2 = inlined_call_operand.hbm [shape: f32[2,8,128], index: 2, kind: output, shape index: {}]  }
   0x1   :  { %9 = vsyncpa [#allocation3 + $0x1], 0 }
   0x2   :  { %10 = vsyncpa [#allocation6], 0 }
   0x3   :  { %12 = vsyncpa [#allocation6 + $0x1], 0 }
   0x4   :  { %13 = vsyncpa [#allocation4], 0 }
   0x5   :  { %15 = vsyncpa [#allocation4 + $0x1], 0  ;;  %s627_s9 = smov 0   ;;  %s629_s10 = smov 0  }
   0x6   :  { %s631_s11 = smov 0   ;;  %s633_s12 = smov 0  }
   0x7   :  { %s635_s13 = smov 0   ;;  %s637_s14 = smov 0  }
   0x8 LB: > { %s374_s15 = sadd.s32 4294967295, %s610_s14   ;;  %s375_s16 = sadd.s32 4294967294, %s610_s14   ;;  %s610_s14 = sphi %s637_s14, %s21_s14   ;;  %s606_s13 = sphi %s635_s13, %s781_s13   ;;  %s602_s12 = sphi %s633_s12, %s780_s12   ;;  %s598_s11 = sphi %s631_s11, %s779_s11   ;;  %s594_s10 = sphi %s629_s10, %s778_s10   ;;  %s590_s9 = sphi %s627_s9, %s777_s9  }
   0x9   : > { %s33_s17 = sadd.s32 1, %s606_s13  ;;  %s42_s18 = sadd.s32 1, %s598_s11 }
   0xa   : > { %p35_p0 = scmp.ge.s32.totalorder %s33_s17, 2  ;;  %p49_p1 = scmp.ne.s32.totalorder %s598_s11, %s594_s10 }
   0xb   : > { %p50_p2 = scmp.eq.s32.totalorder %s610_s14, 0  ;;  %p55_p3 = scmp.ne.s32.totalorder %s594_s10, %s590_s9 }
   0xc   : > { %s783_s17 = smov (%p35_p0, %s33_s17), 0  ;;  %p56_p5 = scmp.eq.s32.totalorder %s374_s15, 0 }
   0xd   : > { %p668_p4 = por %p50_p2, %p49_p1  ;;  %s39_s20 = ssub.s32 %s606_s13, %s783_s17 }
   0xe   : > { %p107_p6 = scmp.eq.s32.totalorder %s374_s15, 1  ;;  %p40_p7 = scmp.eq.s32.totalorder %s39_s20, 0 }
   0xf   : > { %p674_p8 = por %p56_p5, %p55_p3  ;;  %p113_p10 = scmp.eq.s32.totalorder %s375_s16, 1 }
  0x10   : > { %p678_p9 = por %p107_p6, %p49_p1  ;;  %p377_p12 = scmp.ge.s32.totalorder %s610_s14, 2 }
  0x11   : > { %s683_s23 = scalar_select %p40_p7, %s598_s11, %s42_s18  }
  0x12   : > { %p685_p11 = por %p113_p10, %p55_p3  ;;  %p407_p13 = scmp.lt.s32.totalorder %s610_s14, 2 }
  0x13   : > { %s133_s25 = sand.u32 1, %s598_s11   ;;  %s379_s27 = sshll.u32 %s606_s13, 3 }
  0x14   : > { %s378_s26 = sshll.u32 %s133_s25, 3  ;;  %s142_s30 = scalar_lea.hbm %s769_s0, %s379_s27 }
  0x15   : > { %s137_s3 = scalar_lea.vmem [#allocation2], %s378_s26  ;;  %s144_s5 = sshll.u32 %s142_s30, 4  ;;  %s145_s5 = int_to_ptr.hbm [resolvable:$true] %s144_s5 }
  0x16   : > { %s146_s4 = sshll.u32 %s137_s3, 4  ;;  %p698_p0 = pnand %p407_p13, %p668_p4  ;;  %s147_s4 = int_to_ptr.vmem [resolvable:$true] %s146_s4 }
  0x17   : > { %p382_p1 = scmp.ge.s32.totalorder %s610_s14, 1  ;;  %p171_p2 = scmp.lt.s32.totalorder %s610_s14, 3 }
  0x18   : > { %s134_s7 = scalar_lea.sflag [#allocation3], %s133_s25  ;;  %s380_s8 = sshll.u32 %s133_s25, 2 }
  0x19   : > { %399 = dma.hbm_to_vmem [thread:$0]  (!%p698_p0), %s145_s5, 128, %s147_s4, %s134_s7  }
  0x1a   : > { %p172_p3 = pnand %p382_p1, %p171_p2  ;;  %s381_s15 = sshll.u32 %s606_s13, 2 }
  0x1b   : > { %s162_s20 = scalar_lea.hbm %s770_s1, %s381_s15  ;;  %s157_s26 = scalar_lea.vmem [#allocation5], %s380_s8 }
  0x1c   : > { %s166_s19 = sshll.u32 %s157_s26, 4  ;;  %s164_s27 = sshll.u32 %s162_s20, 4  ;;  %s167_s19 = int_to_ptr.vmem [resolvable:$true] %s166_s19  ;;  %s165_s27 = int_to_ptr.hbm [resolvable:$true] %s164_s27 }
  0x1d   : > { %s154_s28 = scalar_lea.sflag [#allocation6], %s133_s25  ;;  %175 = sbr.rel (%p172_p3) target bundleno = 86 (0x56), region = 28 }
  0x1e   : > { %402 = dma.hbm_to_vmem [thread:$0]  (!%p698_p0), %s165_s27, 64, %s167_s19, %s154_s28  }
  0x1f   : > { %s713_s29 = sand.u32 (!%p172_p3), 1, %s594_s10  }
  0x20   : > { %s383_s30 = sshll.u32 (!%p172_p3), %s713_s29, 3  ;;  %s178_s3 = scalar_lea.sflag (!%p172_p3), [#allocation3], %s713_s29 }
  0x21   : > { %s181_s4 = scalar_lea.vmem (!%p172_p3), [#allocation2], %s383_s30 }
  0x22   : > { %577 = dma.done.wait (%p674_p8), %s178_s3, 128  }
  0x23   : > { %579 = vsyncadd (%p674_p8), %s178_s3, 4294967168  ;;  %s384_s25 = sshll.u32 %s713_s29, 2  ;;  %s188_s5 = scalar_lea.sflag [#allocation6], %s713_s29 }
  0x24   : > { %s191_s6 = scalar_lea.vmem [#allocation5], %s384_s25 }
  0x25   : > { %581 = dma.done.wait (%p674_p8), %s188_s5, 64  }
  0x26   : > { %583 = vsyncadd (%p674_p8), %s188_s5, 4294967232  ;;  %v225_v0 = vld [vmem:[%s181_s4] sm:$0xff]  ;;  %v226_v4 = vld [vmem:[%s191_s6] sm:$0xf]  ;;  %s387_s21 = sshll.u32 %s602_s12, 3  ;;  %s217_s16 = scalar_lea.vmem [#allocation7], %s383_s30 }
  0x27   : > { %v231_v1 = vand.u32 2147483647, %v225_v0  ;;  %v227_v6 = vunpack.c.l.bf16 %v226_v4  ;;  %v228_v10 = vmax.f32 %v225_v0, 0.0  ;;  %s266_s15 = scalar_lea.hbm %s771_s2, %s387_s21  ;;  %s268_s18 = sshll.u32 %s217_s16, 4  ;;  %s269_s18 = int_to_ptr.vmem [resolvable:$true] %s268_s18 }
  0x28   : > { %s270_s20 = sshll.u32 %s266_s15, 4  ;;  %s256_s26 = scalar_lea.sflag [#allocation4], %s713_s29  ;;  %s271_s20 = int_to_ptr.hbm [resolvable:$true] %s270_s20 }
  0x29   : > { %v232_v2 = vsub.f32 0.0, %v231_v1  ;;  %v229_v11 = vmul.f32 %v227_v6, %v225_v0  ;;  %s538_s19 = sshra.s32 %s271_s20, 4  ;;  %s544_s3 = scalar_lea.hbm %s771_s2, 16  ;;  %s539_s19 = int_to_ptr.hbm [resolvable:$true] %s538_s19 }
  0x2a   : > { %s540_s12 = scalar_lea.hbm %s539_s19, 8  ;;  %p545_p7 = scmp.lt.s32.totalorder %s539_s19, %s771_s2 }
  0x2b   : > { %v233_v3 = vmul.f32 1.442695, %v232_v2  ;;  %v230_v15 = vsub.f32 %v228_v10, %v229_v11  ;;  %p541_p4 = scmp.ne.s32.totalorder %s539_s19, %s540_s12  ;;  %p546_p8 = scmp.lt.s32.totalorder %s544_s3, %s540_s12 }
  0x2d   : > { %458 = vpow2.f32 %v233_v3  ;;  %p542_p5 = pnand %p541_p4, %p678_p9  ;;  %p547_p10 = por %p546_p8, %p545_p7 }
  0x2f   : > { %p543_p6 = pneg %p542_p5 }
  0x31   : > { %p548_p13 = pnand %p547_p10, %p543_p6 }
  0x33   : > { %v459_v5 = vpop.eup %458 }
  0x34   : > { %v235_v7 = vadd.f32 1.0, %v459_v5  ;;  %v238_v8 = vmul.f32 -0.5, %v459_v5  ;;  %v241_v12 = vand.u32 2147483647, %v459_v5 }
  0x36   : > { %460 = vlog2.f32 %v235_v7  ;;  %v239_v9 = vadd.f32 1.0, %v238_v8  ;;  %vm242_vm0 = vcmp.lt.f32.partialorder %v241_v12, 0.0004427343 }
  0x38   : > { %v240_v13 = vmul.f32 %v459_v5, %v239_v9 }
  0x3c   : > { %v461_v14 = vpop.eup %460 }
  0x3d   : > { %v237_v16 = vmul.f32 0.6931472, %v461_v14 }
  0x3f   : > { %v243_v17 = vsel %vm242_vm0, %v240_v13, %v237_v16 }
  0x40   : > { %v244_v18 = vadd.f32 %v243_v17, %v230_v15 }
  0x42   : > { %v245_v19 = vsub.f32 0.0, %v244_v18 }
  0x44   : > { %v246_v20 = vmul.f32 1.442695, %v245_v19 }
  0x46   : > { %462 = vpow2.f32 %v246_v20 }
  0x4c   : > { %v463_v21 = vpop.eup %462 }
  0x4d   : > { %v248_v22 = vsub.f32 1.0, %v463_v21 }
  0x4f   : > { %v249_v23 = vmul.f32 %v248_v22, %v244_v18 }
  0x51   : > { %v250_v24 = vmul.f32 %v249_v23, %v248_v22 }
  0x53   : > { %254 = vst [vmem:[%s217_s16] sm:$0xff] %v250_v24 }
  0x54   : > { %551 = shalt.err (!%p548_p13)
}
  0x55   : > { %394 = dma.vmem_to_hbm [thread:$0]  (%p678_p9), %s269_s18, 128, %s271_s20, %s256_s26  }
  0x56 PF: > { %s282_s29 = sand.u32 1, %s590_s9   ;;  %p404_p0 = pnand %p377_p12, %p685_p11 }
  0x57   : > { %s283_s25 = scalar_lea.sflag [#allocation4], %s282_s29 }
  0x58   : > { %p405_p1 = pneg %p404_p0 }
  0x5a   : > { %585 = dma.done.wait (%p405_p1), %s283_s25, 128  }
  0x5b   : > { %587 = vsyncadd (%p405_p1), %s283_s25, 4294967168  ;;  %s21_s14 = sadd.s32 1, %s610_s14   ;;  %s777_s9 = smov %s594_s10 }
  0x5c   : > { %p18_p2 = scmp.ge.s32.totalorder %s21_s14, 4   ;;  %s778_s10 = smov %s598_s11 }
  0x5d   : > { %s779_s11 = smov %s683_s23  ;;  %s780_s12 = smov %s606_s13 }
  0x5e   : > { %s781_s13 = smov %s783_s17  ;;  %20 = sbr.rel (!%p18_p2) target bundleno = 8 (0x8), region = 90 }
  0x63   :  { %289 = vsyncpa [#allocation3], 1 }
  0x64   :  { %291 = vsyncpa [#allocation3 + $0x1], 1 }
  0x65   :  { %292 = vsyncpa [#allocation6], 1 }
  0x66   :  { %294 = vsyncpa [#allocation6 + $0x1], 1 }
  0x67   :  { %295 = vsyncpa [#allocation4], 1 }
  0x68   :  { %297 = vsyncpa [#allocation4 + $0x1], 1 }

</bundles_post_ra>
